<compile_context>
chip_gen: v7x
topology: tpu7x:2x2x1
jax: 0.10.0
libtpu: 0.0.40
codegen_flags: <defaults>
</compile_context>

<pallas_src>
import functools

import jax
import jax.numpy as jnp
import numpy as np
from jax.experimental import pallas as pl
from jax.experimental.pallas import tpu as pltpu


def _eca_kernel(x_ref, kT_ref, out_ref, acc_ref, *, inv_hw):
    """x_ref:  (1, C, tHW) input tile (channels on sublanes, pixels on lanes)
       kT_ref: (C, C) transposed banded conv1d matrix (fetched once, reused)
       out_ref:(1, 1, C) sigmoid(conv1d(mean)) for this batch element
       acc_ref:(C, 1) f32 running spatial sum (persists across the HW axis)."""
    t = pl.program_id(1)

    @pl.when(t == 0)
    def _init():
        acc_ref[...] = jnp.zeros_like(acc_ref)

    # Partial spatial sum of this tile: cross-lane reduce -> (C, 1).
    acc_ref[...] += jnp.sum(x_ref[0].astype(jnp.float32), axis=1, keepdims=True)

    @pl.when(t == pl.num_programs(1) - 1)
    def _finalize():
        m = acc_ref[...] * inv_hw                              # (C, 1) global mean
        # Banded conv1d over channels: out[c] = sum_j K[c, j] * m[j]
        #                                      = sum_j kT[j, c] * m[j]
        # VPU broadcast-multiply + sublane reduce; result row is lane-dense.
        y = jnp.sum(kT_ref[...] * m, axis=0, keepdims=True)    # (1, C)
        out_ref[...] = jax.nn.sigmoid(y)[None].astype(out_ref.dtype)


def _pick_hw_tile(hw, c, itemsize, max_block_bytes=4 << 20):
    """Largest tile of the H*W axis that divides HW and keeps the (1, C, tile)
    block <= max_block_bytes (so the double-buffered input blocks plus the
    (C, C) conv matrix fit inside the smallest default scoped-VMEM budget).
    Prefers lane-aligned (multiple-of-128) tiles."""
    if c * hw * itemsize <= max_block_bytes:
        return hw
    divisors = set()
    d = 1
    while d * d <= hw:
        if hw % d == 0:
            divisors.add(d)
            divisors.add(hw // d)
        d += 1
    fitting = [t for t in divisors if c * t * itemsize <= max_block_bytes]
    if not fitting:
        return hw  # fallback: whole image per step (correct, just bigger block)
    aligned = [t for t in fitting if t % 128 == 0]
    return max(aligned) if aligned else max(fitting)


def eca_forward(x, conv_w, k_size=3):
    """x: (N, C, H, W); conv_w: (1, 1, k_size) PyTorch Conv1d weight (no bias).
    Returns sigmoid(conv1d(avg_pool(x))) with shape (N, C, 1, 1)."""
    N, C, H, W = x.shape
    HW = H * W
    w = conv_w.reshape(k_size).astype(jnp.float32)

    # conv1d (pad=(k-1)//2, no bias) across the channel axis as a banded (C, C)
    # matrix; pass its transpose so the in-kernel reduction runs over sublanes
    # and yields a lane-dense (1, C) row.
    half = (k_size - 1) // 2
    K = jnp.zeros((C, C), jnp.float32)
    for t in range(k_size):
        K = K + w[t] * jnp.eye(C, k=t - half, dtype=jnp.float32)
    kT = K.T

    xr = x.reshape(N, C, HW)                      # free reshape, no transpose
    tile = _pick_hw_tile(HW, C, x.dtype.itemsize)
    grid = (N, HW // tile)

    kernel = functools.partial(_eca_kernel, inv_hw=1.0 / HW)
    out = pl.pallas_call(
        kernel,
        out_shape=jax.ShapeDtypeStruct((N, 1, C), x.dtype),
        grid=grid,
        in_specs=[
            pl.BlockSpec((1, C, tile), lambda n, t: (n, 0, t)),
            pl.BlockSpec((C, C), lambda n, t: (0, 0)),
        ],
        out_specs=pl.BlockSpec((1, 1, C), lambda n, t: (n, 0, 0)),
        scratch_shapes=[pltpu.VMEM((C, 1), jnp.float32)],
        compiler_params=pltpu.CompilerParams(
            dimension_semantics=("parallel", "arbitrary")),
    )(xr, kT)

    return out.reshape(N, C, 1, 1)


def eca_reference(x, conv_w, k_size=3):
    """Independent pure-JAX reference mirroring the PyTorch eca_layer.forward."""
    N, C, H, W = x.shape
    w = conv_w.reshape(k_size)
    m = jnp.mean(x.astype(jnp.float32), axis=(2, 3))          # (N, C)
    half = (k_size - 1) // 2
    m_pad = jnp.pad(m, ((0, 0), (half, half)))
    y = jnp.zeros_like(m)
    for t in range(k_size):
        y = y + w[t] * m_pad[:, t:t + C]
    return jax.nn.sigmoid(y)[:, :, None, None].astype(x.dtype)  # (N, C, 1, 1)


if __name__ == "__main__":
    key = jax.random.PRNGKey(0)
    kx, kw = jax.random.split(key)

    N, C, H, W = 2, 4, 16, 16
    x = jax.random.normal(kx, (N, C, H, W), jnp.float32)
    # deterministic synthetic Conv1d(1, 1, 3, bias=False) weight
    conv_w = jax.random.normal(kw, (1, 1, 3), jnp.float32) / np.sqrt(3.0)

    out = jax.jit(eca_forward)(x, conv_w)
    out = jax.block_until_ready(out)

    ref = eca_reference(x, conv_w)
    np.testing.assert_allclose(np.asarray(out), np.asarray(ref),
                               rtol=1e-4, atol=1e-5)
    print("KERNEL_OK")
</pallas_src>

<mosaic_0001>
module attributes {stable_mosaic.version = 11 : i64} {
  func.func @_eca_kernel(%arg0: i32, %arg1: i32, %arg2: memref<1x4x256xf32, #tpu.memory_space<vmem>>, %arg3: memref<4x4xf32, #tpu.memory_space<vmem>>, %arg4: memref<1x1x4xf32, #tpu.memory_space<vmem>>, %arg5: memref<4x1xf32, #tpu.memory_space<vmem>>) attributes {dimension_semantics = [#tpu.dimension_semantics<parallel>, #tpu.dimension_semantics<arbitrary>], iteration_bounds = array<i64: 2, 1>, scalar_prefetch = 0 : i64, scratch_operands = 1 : i64, tpu.core_type = #tpu.core_type<tc>, window_params = [{transform_indices = @transform_0, window_bounds = array<i64: 1, 4, 256>}, {pipeline_mode = #tpu.pipeline_mode<synchronous>, transform_indices = @transform_1, window_bounds = array<i64: 4, 4>}, {transform_indices = @transform_2, window_bounds = array<i64: 1, 1, 4>}]} {
    %c0_i32 = arith.constant 0 : i32
    %0 = arith.cmpi eq, %arg1, %c0_i32 : i32
    %1 = arith.extui %0 : i1 to i32
    %c0_i32_0 = arith.constant 0 : i32
    %2 = arith.cmpi ne, %1, %c0_i32_0 : i32
    scf.if %2 {
      %cst_9 = arith.constant 0.000000e+00 : f32
      %13 = vector.broadcast %cst_9 : f32 to vector<4x1xf32>
      %c0_10 = arith.constant 0 : index
      %c0_11 = arith.constant 0 : index
      %14 = vector.load %arg5[%c0_10, %c0_11] : memref<4x1xf32, #tpu.memory_space<vmem>>, vector<4x1xf32>
      tpu.vector_store %arg5[%c0_10, %c0_11], %13 {strides = array<i32>} : memref<4x1xf32, #tpu.memory_space<vmem>>, vector<4x1xf32>,
    } else {
    }
    %c0 = arith.constant 0 : index
    %c0_1 = arith.constant 0 : index
    %3 = vector.load %arg5[%c0, %c0_1] : memref<4x1xf32, #tpu.memory_space<vmem>>, vector<4x1xf32>
    %c0_2 = arith.constant 0 : index
    %c0_3 = arith.constant 0 : index
    %c0_4 = arith.constant 0 : index
    %4 = vector.load %arg2[%c0_2, %c0_3, %c0_4] : memref<1x4x256xf32, #tpu.memory_space<vmem>>, vector<1x4x256xf32>
    %5 = vector.shape_cast %4 : vector<1x4x256xf32> to vector<4x256xf32>
    %cst = arith.constant dense<0.000000e+00> : vector<4xf32>
    %6 = vector.multi_reduction <add>, %5, %cst [1] : vector<4x256xf32> to vector<4xf32>
    %7 = vector.shape_cast %6 : vector<4xf32> to vector<4x1xf32>
    %8 = arith.addf %3, %7 : vector<4x1xf32>
    %c0_5 = arith.constant 0 : index
    %c0_6 = arith.constant 0 : index
    %9 = vector.load %arg5[%c0_5, %c0_6] : memref<4x1xf32, #tpu.memory_space<vmem>>, vector<4x1xf32>
    tpu.vector_store %arg5[%c0_5, %c0_6], %8 {strides = array<i32>} : memref<4x1xf32, #tpu.memory_space<vmem>>, vector<4x1xf32>,
    %c0_i32_7 = arith.constant 0 : i32
    %10 = arith.cmpi eq, %arg1, %c0_i32_7 : i32
    %11 = arith.extui %10 : i1 to i32
    %c0_i32_8 = arith.constant 0 : i32
    %12 = arith.cmpi ne, %11, %c0_i32_8 : i32
    scf.if %12 {
      %c0_9 = arith.constant 0 : index
      %c0_10 = arith.constant 0 : index
      %13 = vector.load %arg5[%c0_9, %c0_10] : memref<4x1xf32, #tpu.memory_space<vmem>>, vector<4x1xf32>
      %cst_11 = arith.constant 3.906250e-03 : f32
      %14 = vector.broadcast %cst_11 : f32 to vector<4x1xf32>
      %15 = arith.mulf %13, %14 : vector<4x1xf32>
      %c0_12 = arith.constant 0 : index
      %c0_13 = arith.constant 0 : index
      %16 = vector.load %arg3[%c0_12, %c0_13] : memref<4x4xf32, #tpu.memory_space<vmem>>, vector<4x4xf32>
      %17 = vector.broadcast %15 : vector<4x1xf32> to vector<4x4xf32>
      %18 = arith.mulf %16, %17 : vector<4x4xf32>
      %cst_14 = arith.constant dense<0.000000e+00> : vector<4xf32>
      %19 = vector.multi_reduction <add>, %18, %cst_14 [0] : vector<4x4xf32> to vector<4xf32>
      %20 = vector.shape_cast %19 : vector<4xf32> to vector<1x4xf32>
      %21 = arith.negf %20 : vector<1x4xf32>
      %22 = math.exp %21 : vector<1x4xf32>
      %cst_15 = arith.constant 1.000000e+00 : f32
      %23 = vector.broadcast %cst_15 : f32 to vector<1x4xf32>
      %24 = arith.addf %23, %22 : vector<1x4xf32>
      %25 = arith.divf %23, %24 : vector<1x4xf32>
      %26 = vector.shape_cast %25 : vector<1x4xf32> to vector<1x1x4xf32>
      %c0_16 = arith.constant 0 : index
      %c0_17 = arith.constant 0 : index
      %c0_18 = arith.constant 0 : index
      %27 = vector.load %arg4[%c0_16, %c0_17, %c0_18] : memref<1x1x4xf32, #tpu.memory_space<vmem>>, vector<1x1x4xf32>
      tpu.vector_store %arg4[%c0_16, %c0_17, %c0_18], %26 {strides = array<i32>} : memref<1x1x4xf32, #tpu.memory_space<vmem>>, vector<1x1x4xf32>,
    } else {
    }
    return
  }
  func.func @transform_0(%arg0: i32, %arg1: i32) -> (i32, i32, i32) {
    %c0_i32 = arith.constant 0 : i32
    %c0_i32_0 = arith.constant 0 : i32
    return %arg0, %c0_i32, %arg1 : i32, i32, i32
  }
  func.func @transform_1(%arg0: i32, %arg1: i32) -> (i32, i32) {
    %c0_i32 = arith.constant 0 : i32
    %c0_i32_0 = arith.constant 0 : i32
    %c0_i32_1 = arith.constant 0 : i32
    return %c0_i32, %c0_i32_0 : i32, i32
  }
  func.func @transform_2(%arg0: i32, %arg1: i32) -> (i32, i32, i32) {
    %c0_i32 = arith.constant 0 : i32
    %c0_i32_0 = arith.constant 0 : i32
    %c0_i32_1 = arith.constant 0 : i32
    return %arg0, %c0_i32, %c0_i32_0 : i32, i32, i32
  }
}

</mosaic_0001>

<bundles_post_ra>
// kernel: eca_forward.1
= control target key start
LH: loop header
LB: loop body
LE: loop exit
PB: predicated region body
PF: predicated region fallthrough
CT: control target
= control target key end

     0   :  { %7 = vsyncpa [#allocation4], 0  ;;  %s589_s0 = inlined_call_operand.vmem [shape: f32[2,4,256], index: 0, kind: input, shape index: {}]   ;;  %s590_s1 = inlined_call_operand.vmem [shape: f32[4,4], index: 1, kind: input, shape index: {}]   ;;  %s591_s2 = inlined_call_operand.hbm [shape: f32[2,1,4], index: 2, kind: output, shape index: {}]  }
   0x1   :  { %9 = vsyncpa [#allocation4 + $0x1], 0  ;;  %s472_s9 = smov 0   ;;  %s474_s10 = smov 0  }
   0x2   :  { %s476_s11 = smov 0   ;;  %s478_s12 = smov 0  }
   0x3   :  { %s480_s13 = smov 0   ;;  %s482_s14 = smov 0  }
   0x4 LB: > { %s299_s15 = sadd.s32 4294967295, %s452_s14   ;;  %s300_s16 = sadd.s32 4294967294, %s452_s14   ;;  %s452_s14 = sphi %s482_s14, %s15_s14   ;;  %s448_s13 = sphi %s480_s13, %s598_s13   ;;  %s444_s12 = sphi %s478_s12, %s597_s12   ;;  %s440_s11 = sphi %s476_s11, %s596_s11   ;;  %s436_s10 = sphi %s474_s10, %s595_s10   ;;  %s432_s9 = sphi %s472_s9, %s594_s9  }
   0x5   : > { %s27_s17 = sadd.s32 1, %s448_s13  ;;  %s83_s18 = sadd.s32 1, %s440_s11 }
   0x6   : > { %p29_p0 = scmp.ge.s32.totalorder %s27_s17, 2  ;;  %p93_p1 = scmp.ne.s32.totalorder %s440_s11, %s436_s10 }
   0x7   : > { %p94_p2 = scmp.eq.s32.totalorder %s299_s15, 1  ;;  %p99_p3 = scmp.ne.s32.totalorder %s436_s10, %s432_s9 }
   0x8   : > { %s600_s17 = smov (%p29_p0, %s27_s17), 0  ;;  %p100_p5 = scmp.eq.s32.totalorder %s300_s16, 1 }
   0x9   : > { %p512_p4 = por %p94_p2, %p93_p1  ;;  %s80_s20 = ssub.s32 %s448_s13, %s600_s17 }
   0xa   : > { %p303_p6 = scmp.ge.s32.totalorder %s452_s14, 1  ;;  %p81_p7 = scmp.eq.s32.totalorder %s80_s20, 0 }
   0xb   : > { %p519_p8 = por %p100_p5, %p99_p3  ;;  %p134_p9 = scmp.lt.s32.totalorder %s452_s14, 3 }
   0xc   : > { %s525_s22 = scalar_select %p81_p7, %s440_s11, %s83_s18  }
   0xd   : > { %p135_p10 = pnand %p303_p6, %p134_p9 }
   0xe   : > { %p160_p11 = scmp.lt.s32.totalorder (!%p135_p10), %s444_s12, 1  ;;  %vm173_vm0 = vcmask (!%p135_p10), 3072   ;;  %v454_v0 = vmov (!%p135_p10), 0.0   ;;  %vm180_vm1 = vcmask (!%p135_p10), 1043456   ;;  %v455_v6 = vmov (!%p135_p10), 0   ;;  %s157_s30 = sand.u32 (!%p135_p10), 1, %s436_s10  }
   0xf   : > { %138 = sbr.rel (%p135_p10) target bundleno = 369 (0x171), region = 28  ;;  %174 = vst.msk [vmem:[#allocation2] sm:$0xf] (!%p135_p10), %vm173_vm0, %v454_v0  ;;  %368 = vset.pattern.permute.xlu0 (!%p135_p10), %v455_v6  ;;  %v194_v12 = vld [vmem:[%s590_s1] sm:$0xf] (!%p135_p10)  ;;  %vm201_vm2 = vcmask (!%p135_p10), 27648  }
  0x10   : > { %s307_s3 = sshll.u32 (!%p135_p10), %s444_s12, 4  ;;  %s158_s4 = scalar_lea.vmem (!%p135_p10), [#allocation3], %s157_s30  ;;  %vm215_vm3 = vcmask (!%p135_p10), 24576  }
  0x11   : > { %s230_s5 = sshll.u32 (!%p135_p10), %s158_s4, 4  ;;  %s542_s8 = scalar_lea.hbm (!%p135_p10), %s591_s2, %s307_s3  ;;  %s544_s5 = int_to_ptr.vmem [resolvable:$true] %s230_s5 }
  0x12   : > { %s218_s15 = scalar_lea.sflag (!%p135_p10), [#allocation4], %s157_s30  ;;  %s374_s16 = scalar_lea.vmem (!%p135_p10), %s544_s5, 16 }
  0x13   : > { %p375_p12 = scmp.ne.s32.totalorder (!%p135_p10), %s544_s5, %s374_s16 }
  0x15   : > { %p376_p13 = pnand (!%p135_p10), %p375_p12, %p512_p4 }
  0x16   : > { %s161_s23 = scalar_select %p160_p11, %s444_s12, 1  ;;  %v175_v7 = vld [vmem:[#allocation2] sm:$0xf] }
  0x17   : > { %p377_p0 = pneg %p376_p13  ;;  %s456_s12 = smov [#allocation3]  }
  0x18   : > { %s310_s24 = sshll.u32 %s161_s23, 3  ;;  %s378_s18 = sshll.u32 %s456_s12, 4  ;;  %s379_s18 = int_to_ptr.vmem [resolvable:$false] %s378_s18 }
  0x19   : > { %s167_s27 = scalar_lea.vmem %s589_s0, %s310_s24  ;;  %s380_s20 = scalar_lea.vmem %s379_s18, 32 }
  0x1a   : > { %v176_v1 = vld [vmem:[%s167_s27] sm:$0xff]  ;;  %p381_p1 = scmp.lt.s32.totalorder %s544_s5, %s379_s18  ;;  %p382_p2 = scmp.lt.s32.totalorder %s380_s20, %s374_s16 }
  0x1b   : > { %v178_v2 = vcombine.high %v176_v1, %v176_v1  ;;  %v181_v3 = vsel %vm180_vm1, %v176_v1, 0.0 }
  0x1c   : > { %p383_p3 = por %p382_p2, %p381_p1 }
  0x1d   : > { %v182_v4 = vsel %vm180_vm1, %v178_v2, 0.0 }
  0x1e   : > { %v183_v5 = vadd.f32 %v182_v4, %v181_v3  ;;  %p384_p5 = pnand %p383_p3, %p377_p0 }
  0x20   : > { %184 = vadd.xlane.f32.xlu0 %v183_v5 }
  0xad   : > { %v185_v8 = vpop.xlane.xlu0 %184 }
  0xae   : > { %v186_v9 = vadd.f32 %v185_v8, %v175_v7 }
  0xb0   : > { %188 = vst.msk [vmem:[#allocation2] sm:$0xf] %vm173_vm0, %v186_v9 }
  0xb7   : > { %v192_v10 = vld [vmem:[#allocation2] sm:$0xf] }
  0xb8   : > { %v193_v11 = vmul.f32 0.00390625, %v192_v10 }
  0xba   : > { %197 = vperm.xlu0 %368, %v193_v11  }
 0x139   : > { %v198_v13 = vpop.permute.xlu0 %197 }
 0x13a   : > { %v200_v14 = vmul.f32 %v198_v13, %v194_v12 }
 0x13c   : > { %v202_v15 = vsel %vm201_vm2, %v200_v14, 0.0 }
 0x13d   : > { %v203_v16 = vrot.slane %v202_v15, 4 }
 0x13f   : > { %v204_v17 = vadd.f32 %v203_v16, %v202_v15 }
 0x141   : > { %v205_v18 = vrot.slane %v204_v17, 2 }
 0x143   : > { %v206_v19 = vadd.f32 %v205_v18, %v204_v17 }
 0x145   : > { %v207_v20 = vrot.slane %v206_v19, 1 }
 0x147   : > { %v208_v21 = vadd.f32 %v207_v20, %v206_v19 }
 0x149   : > { %v306_v22 = vmul.f32 -1.442695, %v208_v21 }
 0x14b   : > { %370 = vpow2.f32 %v306_v22 }
 0x155   : > { %v371_v23 = vpop.eup %370 }
 0x156   : > { %v212_v24 = vadd.f32 1.0, %v371_v23 }
 0x158   : > { %372 = vrcp.f32 %v212_v24 }
 0x162   : > { %v373_v25 = vpop.eup %372 }
 0x163   : > { %216 = vst.msk [vmem:[%s158_s4] sm:$0x1] %vm215_vm3, %v373_v25 }
 0x164   : > { %387 = shalt.err (!%p384_p5)
}
 0x165   : > { %s388_s23 = scalar_lea.hbm %s542_s8, 16  ;;  %s392_s26 = scalar_lea.hbm %s591_s2, 32 }
 0x166   : > { %p389_p6 = scmp.ne.s32.totalorder %s542_s8, %s388_s23  ;;  %p393_p10 = scmp.lt.u32.totalorder %s542_s8, %s591_s2 }
 0x167   : > { %p394_p11 = scmp.lt.u32.totalorder %s392_s26, %s388_s23  ;;  %p396_p13 = scmp.lt.u32.totalorder %s388_s23, %s542_s8 }
 0x168   : > { %p390_p7 = pnand %p389_p6, %p512_p4 }
 0x169   : > { %p395_p12 = por %p394_p11, %p393_p10 }
 0x16a   : > { %p391_p9 = pneg %p390_p7 }
 0x16b   : > { %p397_p0 = por %p396_p13, %p395_p12 }
 0x16d   : > { %p398_p1 = pnand %p397_p0, %p391_p9 }
 0x16f   : > { %401 = shalt.err (!%p398_p1)
}
 0x170   : > { %311 = dma.vmem_to_hbm [thread:$0]  (%p512_p4), %s544_s5, 16, %s542_s8, %s218_s15  }
 0x171 PF: > { %p317_p2 = scmp.ge.s32.totalorder %s452_s14, 2  ;;  %s242_s29 = sand.u32 1, %s432_s9  }
 0x172   : > { %s243_s30 = scalar_lea.sflag [#allocation4], %s242_s29 }
 0x173   : > { %p314_p3 = pnand %p317_p2, %p519_p8 }
 0x175   : > { %427 = dma.done.wait (!%p314_p3), %s243_s30, 16  }
 0x176   : > { %429 = vsyncadd (!%p314_p3), %s243_s30, 4294967280  ;;  %s15_s14 = sadd.s32 1, %s452_s14   ;;  %s594_s9 = smov %s436_s10 }
 0x177   : > { %p12_p5 = scmp.ge.s32.totalorder %s15_s14, 4   ;;  %s595_s10 = smov %s440_s11 }
 0x178   : > { %s596_s11 = smov %s525_s22  ;;  %s597_s12 = smov %s448_s13 }
 0x179   : > { %s598_s13 = smov %s600_s17  ;;  %14 = sbr.rel (!%p12_p5) target bundleno = 4 (0x4), region = 71 }
 0x180   :  { %247 = vsyncpa [#allocation4], 1 }
 0x181   :  { %249 = vsyncpa [#allocation4 + $0x1], 1 }

</bundles_post_ra>
